<compile_context>
chip_gen: v7x
topology: tpu7x:2x2x1
jax: 0.10.0
libtpu: 0.0.40
codegen_flags: <defaults>
</compile_context>

<pallas_src>
import jax
import jax.numpy as jnp
from jax import lax
from jax.experimental import pallas as pl
from jax.experimental.pallas import tpu as pltpu

_LANE = 128
_SUBLANE = 8


def _round_up(v, m):
    return ((v + m - 1) // m) * m


def _vmem_budget():
    """Return (vmem_limit_bytes, working-set budget) for the local TPU generation."""
    try:
        cap = int(pltpu.get_tpu_info().vmem_capacity_bytes)
    except Exception:  # unknown platform -> be conservative (v7x per-core size)
        cap = 64 * 1024 * 1024
    limit = min((cap * 3) // 4, 100 * 1024 * 1024)  # 128 MiB -> 96 MiB, 64 MiB -> 48 MiB
    limit = max(limit, 32 * 1024 * 1024)
    budget = (limit * 3) // 4                       # headroom for Mosaic internal scratch
    return limit, budget


def _softmax_dim0_kernel(x_ref, o_ref):
    # Upcast to f32 so exp and the axis-0 sum never accumulate in bf16.
    x = x_ref[...].astype(jnp.float32)
    # Max subtraction is mathematically identical to exp(x)/sum(exp(x)) but
    # removes the exp-overflow -> NaN failure mode; the max (XLU) and subtract
    # (VPU) hide under the HBM DMAs of this mem-bound kernel.
    m = jnp.max(x, axis=0, keepdims=True)
    e = jnp.exp(x - m)
    denom = jnp.sum(e, axis=0, keepdims=True)
    # Exact reciprocal: one per column, negligible here; approx=True would add
    # ~1e-4 relative error for no measurable gain in an HBM-bound kernel.
    o_ref[...] = (e * pl.reciprocal(denom)).astype(o_ref.dtype)


def _two_pass_softmax(x2d, vmem_limit, budget, tn=None, td=None):
    """Large-N path: 2 reads + 1 write of x, all lane-dense tiles."""
    # TODO(synk): add an online-max (flash-style) rescale in pass 1 for exp
    # overflow robustness; the PyTorch module itself uses plain exp.
    n_rows, d = x2d.shape
    itemsize = jnp.dtype(x2d.dtype).itemsize
    d_pad128 = _round_up(d, _LANE)
    bytes_per_elem = 2 * itemsize + 2 * itemsize + 2 * 4  # dbl-buffered in/out + f32 temps

    if tn is None:
        tn = min(_round_up(n_rows, _SUBLANE), 1024)
    if td is None:
        if d <= _LANE:
            td = d
        else:
            td = max(_LANE,
                     min(((budget // (tn * bytes_per_elem)) // _LANE) * _LANE, d_pad128))

    d_tiles = pl.cdiv(d, td)
    n_tiles = pl.cdiv(n_rows, tn)

    # Pass 1: f32 column sums of exp(x), accumulated over the (last) N grid axis.
    def colsum_kernel(x_ref, s_ref, acc_ref):
        k = pl.program_id(1)

        @pl.when(k == 0)
        def _init():
            acc_ref[...] = jnp.zeros_like(acc_ref)

        e = jnp.exp(x_ref[...].astype(jnp.float32))
        # Mask rows past N: the ragged last N-block is padded with garbage on
        # load and would otherwise contaminate the column sums.
        row = k * tn + lax.broadcasted_iota(jnp.int32, e.shape, 0)
        acc_ref[...] += jnp.sum(jnp.where(row < n_rows, e, 0.0),
                                axis=0, keepdims=True)

        @pl.when(k == pl.num_programs(1) - 1)
        def _fin():
            s_ref[...] = acc_ref[...]

    col_sums = pl.pallas_call(
        colsum_kernel,
        out_shape=jax.ShapeDtypeStruct((1, d), jnp.float32),
        grid=(d_tiles, n_tiles),
        in_specs=[pl.BlockSpec((tn, td), lambda j, k: (k, j))],
        out_specs=pl.BlockSpec((1, td), lambda j, k: (0, j)),
        scratch_shapes=[pltpu.VMEM((1, td), jnp.float32)],
        compiler_params=pltpu.CompilerParams(
            dimension_semantics=("parallel", "arbitrary"),
            vmem_limit_bytes=vmem_limit,
        ),
    )(x2d)

    # Pass 2: re-read x, multiply exp(x) by the broadcast reciprocal.
    def normalize_kernel(x_ref, s_ref, o_ref):
        inv = pl.reciprocal(s_ref[...])
        o_ref[...] = (jnp.exp(x_ref[...].astype(jnp.float32)) * inv).astype(o_ref.dtype)

    return pl.pallas_call(
        normalize_kernel,
        out_shape=jax.ShapeDtypeStruct((n_rows, d), x2d.dtype),
        grid=(d_tiles, n_tiles),
        in_specs=[pl.BlockSpec((tn, td), lambda j, k: (k, j)),
                  pl.BlockSpec((1, td), lambda j, k: (0, j))],
        out_specs=pl.BlockSpec((tn, td), lambda j, k: (k, j)),
        compiler_params=pltpu.CompilerParams(
            dimension_semantics=("parallel", "parallel"),
            vmem_limit_bytes=vmem_limit,
        ),
    )(x2d, col_sums)


def my_softmax(x):
    """Pallas equivalent of MySoftmax.forward: exp(x) / exp(x).sum(0, keepdim=True).

    Works for any rank >= 1: trailing dims are flattened into the lane axis
    (the reduction over dim 0 commutes with that reshape).
    """
    orig_shape = x.shape
    n_rows = orig_shape[0]
    x2d = x.reshape(n_rows, -1)
    d = x2d.shape[1]
    itemsize = jnp.dtype(x2d.dtype).itemsize

    vmem_limit, budget = _vmem_budget()
    d_pad128 = _round_up(d, _LANE)

    # Live VMEM per lane-column of a full-N block: double-buffered input +
    # double-buffered output + ~2 full-block f32 temporaries inside the kernel.
    bytes_per_col = n_rows * (2 * itemsize + 2 * itemsize + 2 * 4)
    narrowest = d if d <= _LANE else _LANE

    if bytes_per_col * narrowest <= budget:
        # Single pass: full-N column blocks, lane-tiled "parallel" grid.
        if d <= _LANE:
            td = d
        else:
            td = min(((budget // bytes_per_col) // _LANE) * _LANE, d_pad128)
            if d_pad128 >= 2 * _LANE:
                # Keep >= 2 grid steps so both v7x TensorCores get work.
                td = min(td, _round_up(d_pad128 // 2, _LANE))
        out = pl.pallas_call(
            _softmax_dim0_kernel,
            out_shape=jax.ShapeDtypeStruct((n_rows, d), x2d.dtype),
            grid=(pl.cdiv(d, td),),
            in_specs=[pl.BlockSpec((n_rows, td), lambda j: (0, j))],
            out_specs=pl.BlockSpec((n_rows, td), lambda j: (0, j)),
            compiler_params=pltpu.CompilerParams(
                dimension_semantics=("parallel",),
                vmem_limit_bytes=vmem_limit,
            ),
        )(x2d)
    else:
        out = _two_pass_softmax(x2d, vmem_limit, budget)

    return out.reshape(orig_shape)


def _reference(x):
    x_exp = jnp.exp(x.astype(jnp.float32))
    return (x_exp / jnp.sum(x_exp, axis=0, keepdims=True)).astype(x.dtype)


if __name__ == "__main__":
    key = jax.random.PRNGKey(0)
    k1, k2, k3, k4, k5 = jax.random.split(key, 5)

    # Small correctness shapes consistent with the module (reduction over dim 0).
    f32_tests = [
        jax.random.normal(k1, (8, 256), dtype=jnp.float32),    # lane-aligned, 2 grid steps
        jax.random.normal(k2, (12, 200), dtype=jnp.float32),   # ragged last lane-tile
        jax.random.normal(k3, (4, 6, 50), dtype=jnp.float32),  # rank-3, trailing dims flattened
    ]
    for x in f32_tests:
        out = jax.block_until_ready(my_softmax(x))
        ref = _reference(x)
        assert out.shape == ref.shape and out.dtype == ref.dtype
        assert jnp.allclose(out, ref, rtol=1e-5, atol=1e-6), f"mismatch for shape {x.shape}"

    # bf16 input: kernel upcasts to f32 internally, output stays bf16.
    x_bf = jax.random.normal(k4, (16, 384), dtype=jnp.bfloat16)
    out_bf = jax.block_until_ready(my_softmax(x_bf))
    ref_bf = _reference(x_bf)
    assert out_bf.shape == ref_bf.shape and out_bf.dtype == jnp.bfloat16
    assert jnp.allclose(out_bf.astype(jnp.float32), ref_bf.astype(jnp.float32),
                        rtol=2e-2, atol=2e-2)

    # Exercise the large-N two-pass path directly with tiny tiles (ragged N tile).
    x_big = jax.random.normal(k5, (40, 200), dtype=jnp.float32)
    limit, budget = _vmem_budget()
    out2 = jax.block_until_ready(_two_pass_softmax(x_big, limit, budget, tn=16, td=128))
    ref2 = _reference(x_big)
    assert jnp.allclose(out2, ref2, rtol=1e-5, atol=1e-6), "two-pass path mismatch"

    print("KERNEL_OK")
</pallas_src>

<mosaic_0001>
module attributes {stable_mosaic.version = 11 : i64} {
  func.func @_softmax_dim0_kernel(%arg0: i32, %arg1: memref<8x128xf32, #tpu.memory_space<vmem>>, %arg2: memref<8x128xf32, #tpu.memory_space<vmem>>) attributes {dimension_semantics = [#tpu.dimension_semantics<parallel>], iteration_bounds = array<i64: 2>, scalar_prefetch = 0 : i64, scratch_operands = 0 : i64, tpu.core_type = #tpu.core_type<tc>, window_params = [{transform_indices = @transform_0, window_bounds = array<i64: 8, 128>}, {transform_indices = @transform_1, window_bounds = array<i64: 8, 128>}]} {
    %c0 = arith.constant 0 : index
    %c0_0 = arith.constant 0 : index
    %0 = vector.load %arg1[%c0, %c0_0] : memref<8x128xf32, #tpu.memory_space<vmem>>, vector<8x128xf32>
    %cst = arith.constant dense<0xFF800000> : vector<128xf32>
    %1 = vector.multi_reduction <maximumf>, %0, %cst [0] : vector<8x128xf32> to vector<128xf32>
    %2 = vector.shape_cast %1 : vector<128xf32> to vector<1x128xf32>
    %3 = vector.broadcast %2 : vector<1x128xf32> to vector<8x128xf32>
    %4 = arith.subf %0, %3 : vector<8x128xf32>
    %5 = math.exp %4 : vector<8x128xf32>
    %cst_1 = arith.constant dense<0.000000e+00> : vector<128xf32>
    %6 = vector.multi_reduction <add>, %5, %cst_1 [0] : vector<8x128xf32> to vector<128xf32>
    %7 = vector.shape_cast %6 : vector<128xf32> to vector<1x128xf32>
    %8 = tpu.reciprocal %7 : vector<1x128xf32> -> vector<1x128xf32>
    %9 = vector.broadcast %8 : vector<1x128xf32> to vector<8x128xf32>
    %10 = arith.mulf %5, %9 : vector<8x128xf32>
    %c0_2 = arith.constant 0 : index
    %c0_3 = arith.constant 0 : index
    %11 = vector.load %arg2[%c0_2, %c0_3] : memref<8x128xf32, #tpu.memory_space<vmem>>, vector<8x128xf32>
    tpu.vector_store %arg2[%c0_2, %c0_3], %10 {strides = array<i32>} : memref<8x128xf32, #tpu.memory_space<vmem>>, vector<8x128xf32>,
    return
  }
  func.func @transform_0(%arg0: i32) -> (i32, i32) {
    %c0_i32 = arith.constant 0 : i32
    %c0_i32_0 = arith.constant 0 : i32
    return %c0_i32, %arg0 : i32, i32
  }
  func.func @transform_1(%arg0: i32) -> (i32, i32) {
    %c0_i32 = arith.constant 0 : i32
    %c0_i32_0 = arith.constant 0 : i32
    return %c0_i32, %arg0 : i32, i32
  }
}

</mosaic_0001>

<bundles_post_ra>
// kernel: tpu_custom_call.1
= control target key start
LH: loop header
LB: loop body
LE: loop exit
PB: predicated region body
PF: predicated region fallthrough
CT: control target
= control target key end

     0   :  { %6 = vsyncpa [#allocation3], 0  ;;  %s568_s0 = inlined_call_operand.hbm [shape: f32[8,256], index: 0, kind: input, shape index: {}]   ;;  %s569_s1 = inlined_call_operand.hbm [shape: f32[8,256], index: 1, kind: output, shape index: {}]  }
   0x1   :  { %8 = vsyncpa [#allocation3 + $0x1], 0 }
   0x2   :  { %9 = vsyncpa [#allocation4], 0 }
   0x3   :  { %11 = vsyncpa [#allocation4 + $0x1], 0  ;;  %s407_s6 = smov 0   ;;  %s409_s7 = smov 0  }
   0x4   :  { %s411_s8 = smov 0   ;;  %s413_s9 = smov 0  }
   0x5 LB: > { %s428_s10 = sadd.s32 4294967295, %s393_s9   ;;  %s235_s11 = sadd.s32 4294967294, %s393_s9   ;;  %s393_s9 = sphi %s413_s9, %s584_s9   ;;  %s389_s8 = sphi %s411_s8, %s583_s8   ;;  %s385_s7 = sphi %s409_s7, %s582_s7   ;;  %s381_s6 = sphi %s407_s6, %s581_s6  }
   0x6   : > { %s432_s12 = sadd.s32 1, %s393_s9   ;;  %s24_s13 = sadd.s32 1, %s389_s8 }
   0x7   : > { %s21_s14 = ssub.s32 %s393_s9, %s432_s12  ;;  %p31_p0 = scmp.ne.s32.totalorder %s389_s8, %s385_s7 }
   0x8   : > { %p22_p1 = scmp.eq.s32.totalorder %s21_s14, 0  ;;  %p32_p2 = scmp.eq.s32.totalorder %s393_s9, 0 }
   0x9   : > { %p37_p3 = scmp.ne.s32.totalorder %s385_s7, %s381_s6  ;;  %p38_p4 = scmp.eq.s32.totalorder %s428_s10, 0 }
   0xa   : > { %s444_s15 = scalar_select %p22_p1, %s389_s8, %s24_s13  }
   0xb   : > { %p446_p5 = por %p32_p2, %p31_p0  ;;  %p450_p6 = por %p38_p4, %p37_p3 }
   0xc   : > { %p61_p7 = scmp.eq.s32.totalorder %s428_s10, 1  ;;  %p67_p8 = scmp.eq.s32.totalorder %s235_s11, 1 }
   0xd   : > { %p259_p10 = scmp.lt.s32.totalorder %s393_s9, 2  ;;  %s87_s20 = sand.u32 1, %s389_s8  }
   0xe   : > { %p457_p11 = por %p61_p7, %p31_p0  ;;  %p461_p12 = por %p67_p8, %p37_p3 }
   0xf   : > { %s239_s21 = sshll.u32 %s393_s9, 7  ;;  %s238_s22 = sshll.u32 %s87_s20, 3 }
  0x10   : > { %s573_s18 = scalar_select %p457_p11, 1, 0 }
  0x11   : > { %s574_s19 = scalar_select %p461_p12, 1, 0 }
  0x12   : > { %s470_s25 = scalar_lea.hbm %s568_s0, %s239_s21  ;;  %s91_s26 = scalar_lea.vmem [#allocation2], %s238_s22 }
  0x13   : > { %s98_s27 = sshll.u32 %s91_s26, 4  ;;  %p474_p13 = pnand %p259_p10, %p446_p5  ;;  %s478_s27 = int_to_ptr.vmem [resolvable:$true] %s98_s27 }
  0x14   : > { %s88_s29 = scalar_lea.sflag [#allocation3], %s87_s20  ;;  %s297_s30 = scalar_lea.hbm %s470_s25, 128 }
  0x15   : > { %p298_p2 = scmp.ne.s32.totalorder %s470_s25, %s297_s30  ;;  %p299_p3 = pneg %p474_p13 }
  0x16   : > { %s302_s4 = scalar_lea.hbm %s568_s0, 256  ;;  %p303_p5 = scmp.lt.u32.totalorder %s470_s25, %s568_s0 }
  0x17   : > { %p300_p4 = pnand %p299_p3, %p298_p2  ;;  %p304_p8 = scmp.lt.u32.totalorder %s302_s4, %s297_s30 }
  0x18   : > { %p306_p9 = scmp.lt.u32.totalorder %s297_s30, %s470_s25 }
  0x19   : > { %p301_p7 = pneg %p300_p4  ;;  %p305_p10 = por %p304_p8, %p303_p5 }
  0x1b   : > { %p307_p0 = por %p306_p9, %p305_p10 }
  0x1d   : > { %p308_p1 = pnand %p307_p0, %p301_p7 }
  0x1f   : > { %311 = shalt.err (!%p308_p1)
}
  0x20   : > { %s312_s13 = scalar_lea.vmem %s478_s27, 128  ;;  %s395_s14 = smov [#allocation2]  }
  0x21   : > { %p313_p2 = scmp.ne.s32.totalorder %s478_s27, %s312_s13  ;;  %s317_s16 = sshll.u32 %s395_s14, 4  ;;  %s318_s16 = int_to_ptr.vmem [resolvable:$false] %s317_s16 }
  0x22   : > { %s319_s20 = scalar_lea.vmem %s318_s16, 256  ;;  %p320_p11 = scmp.lt.s32.totalorder %s478_s27, %s318_s16 }
  0x23   : > { %p315_p4 = pnand %p313_p2, %p299_p3  ;;  %p321_p5 = scmp.lt.s32.totalorder %s319_s20, %s312_s13 }
  0x25   : > { %p316_p12 = pneg %p315_p4  ;;  %p322_p8 = por %p321_p5, %p320_p11 }
  0x27   : > { %p323_p9 = pnand %p322_p8, %p316_p12 }
  0x29   : > { %326 = shalt.err (!%p323_p9)
}
  0x2a   : > { %254 = dma.hbm_to_vmem [thread:$0]  (!%p474_p13), %s470_s25, 128, %s478_s27, %s88_s29  }
  0x2b   : > { %p576_p0 = scmp.lt.s32.totalorder %s393_s9, 3  ;;  %p577_p1 = scmp.ge.s32.totalorder %s393_s9, 1 }
  0x2d   : > { %p104_p3 = pnand %p577_p1, %p576_p0 }
  0x2e   : > { %s512_s21 = sand.u32 (!%p104_p3), 1, %s385_s7  }
  0x2f   : > { %107 = sbr.rel (%p104_p3) target bundleno = 122 (0x7a), region = 24  ;;  %s241_s22 = sshll.u32 (!%p104_p3), %s512_s21, 3 }
  0x30   : > { %s110_s23 = scalar_lea.sflag (!%p104_p3), [#allocation3], %s512_s21  ;;  %s113_s24 = scalar_lea.vmem (!%p104_p3), [#allocation2], %s241_s22 }
  0x36   : > { %372 = dma.done.wait (%p450_p6), %s110_s23, 128  }
  0x37   : > { %374 = vsyncadd (%p450_p6), %s110_s23, 4294967168  ;;  %v132_v0 = vld [vmem:[%s113_s24] sm:$0xff]  ;;  %s131_s17 = scalar_lea.vmem [#allocation5], %s241_s22  ;;  %s244_s26 = sshll.u32 %s428_s10, 7 }
  0x38   : > { %v133_v1 = vrot.slane %v132_v0, 4  ;;  %s165_s25 = sshll.u32 %s131_s17, 4  ;;  %s526_s29 = scalar_lea.hbm %s569_s1, %s244_s26  ;;  %s521_s25 = int_to_ptr.vmem [resolvable:$true] %s165_s25 }
  0x39   : > { %s152_s30 = scalar_lea.sflag [#allocation4], %s512_s21  ;;  %s327_s2 = scalar_lea.vmem %s521_s25, 128 }
  0x3a   : > { %v134_v2 = vmax.f32 %v132_v0, %v133_v1  ;;  %p328_p6 = scmp.ne.s32.totalorder %s521_s25, %s327_s2  ;;  %p578_p11 = scmp.ne.s32.totalorder %s573_s18, 0 }
  0x3b   : > { %s396_s10 = smov [#allocation5]  }
  0x3c   : > { %v135_v3 = vrot.slane %v134_v2, 2  ;;  %p329_p12 = pnand %p328_p6, %p578_p11  ;;  %s331_s3 = sshll.u32 %s396_s10, 4  ;;  %s332_s3 = int_to_ptr.vmem [resolvable:$false] %s331_s3 }
  0x3d   : > { %s333_s4 = scalar_lea.vmem %s332_s3, 256  ;;  %p334_p7 = scmp.lt.s32.totalorder %s521_s25, %s332_s3 }
  0x3e   : > { %v136_v4 = vmax.f32 %v134_v2, %v135_v3  ;;  %p330_p13 = pneg %p329_p12  ;;  %p335_p10 = scmp.lt.s32.totalorder %s333_s4, %s327_s2 }
  0x40   : > { %v137_v5 = vrot.slane %v136_v4, 1  ;;  %p336_p2 = por %p335_p10, %p334_p7 }
  0x42   : > { %v138_v6 = vmax.f32 %v136_v4, %v137_v5  ;;  %p337_p4 = pnand %p336_p2, %p330_p13 }
  0x44   : > { %v139_v7 = vsub.f32 %v132_v0, %v138_v6 }
  0x46   : > { %v140_v8 = vmul.f32 1.442695, %v139_v7 }
  0x48   : > { %293 = vpow2.f32 %v140_v8 }
  0x52   : > { %v294_v9 = vpop.eup %293 }
  0x53   : > { %v142_v10 = vrot.slane %v294_v9, 4 }
  0x55   : > { %v143_v11 = vadd.f32 %v294_v9, %v142_v10 }
  0x57   : > { %v144_v12 = vrot.slane %v143_v11, 2 }
  0x59   : > { %v145_v13 = vadd.f32 %v144_v12, %v143_v11 }
  0x5b   : > { %v146_v14 = vrot.slane %v145_v13, 1 }
  0x5d   : > { %v147_v15 = vadd.f32 %v146_v14, %v145_v13 }
  0x5f   : > { %295 = vrcp.f32 %v147_v15 }
  0x69   : > { %v296_v16 = vpop.eup %295 }
  0x6a   : > { %v149_v17 = vmul.f32 %v296_v16, %v294_v9 }
  0x6c   : > { %150 = vst [vmem:[%s131_s17] sm:$0xff] %v149_v17 }
  0x6d   : > { %340 = shalt.err (!%p337_p4)
}
  0x6e   : > { %s341_s5 = scalar_lea.hbm %s526_s29, 128  ;;  %s345_s14 = scalar_lea.hbm %s569_s1, 256 }
  0x6f   : > { %p342_p5 = scmp.ne.s32.totalorder %s526_s29, %s341_s5  ;;  %p346_p0 = scmp.lt.u32.totalorder %s526_s29, %s569_s1 }
  0x70   : > { %p347_p1 = scmp.lt.u32.totalorder %s345_s14, %s341_s5  ;;  %p349_p6 = scmp.lt.u32.totalorder %s341_s5, %s526_s29 }
  0x71   : > { %p343_p8 = pnand %p342_p5, %p578_p11 }
  0x72   : > { %p348_p3 = por %p347_p1, %p346_p0 }
  0x73   : > { %p344_p9 = pneg %p343_p8 }
  0x74   : > { %p350_p12 = por %p349_p6, %p348_p3 }
  0x76   : > { %p351_p13 = pnand %p350_p12, %p344_p9 }
  0x78   : > { %354 = shalt.err (!%p351_p13)
}
  0x79   : > { %249 = dma.vmem_to_hbm [thread:$0]  (%p578_p11), %s521_s25, 128, %s526_s29, %s152_s30  }
  0x7a PF: > { %s177_s21 = sand.u32 1, %s381_s6   ;;  %p579_p7 = scmp.ne.s32.totalorder %s574_s19, 0 }
  0x7b   : > { %p580_p10 = scmp.ge.s32.totalorder %s393_s9, 2  ;;  %s178_s22 = scalar_lea.sflag [#allocation4], %s177_s21 }
  0x7d   : > { %p256_p2 = pnand %p580_p10, %p579_p7 }
  0x7f   : > { %376 = dma.done.wait (!%p256_p2), %s178_s22, 128  }
  0x80   : > { %378 = vsyncadd (!%p256_p2), %s178_s22, 4294967168  ;;  %p14_p4 = scmp.ge.s32.totalorder %s432_s12, 4   ;;  %s581_s6 = smov %s385_s7 }
  0x81   : > { %s582_s7 = smov %s389_s8  ;;  %s583_s8 = smov %s444_s15 }
  0x82   : > { %s584_s9 = smov %s432_s12  ;;  %16 = sbr.rel (!%p14_p4) target bundleno = 5 (0x5), region = 69 }
  0x89   :  { %183 = vsyncpa [#allocation3], 1 }
  0x8a   :  { %185 = vsyncpa [#allocation3 + $0x1], 1 }
  0x8b   :  { %186 = vsyncpa [#allocation4], 1 }
  0x8c   :  { %188 = vsyncpa [#allocation4 + $0x1], 1 }

</bundles_post_ra>
